<compile_context>
chip_gen: v6e
topology: v6e:2x2x1
jax: 0.10.0
libtpu: 0.0.40
codegen_flags: <defaults>
</compile_context>

<pallas_src>
import functools

import jax
import jax.numpy as jnp
from jax.experimental import pallas as pl
from jax.experimental.pallas import tpu as pltpu


def _round_up(x, m):
    return ((x + m - 1) // m) * m


def _device_budgets():
    """(vmem_capacity_bytes, target_x_block_bytes) for the current TPU generation."""
    vmem_cap = 64 << 20                                    # conservative default (v7x)
    try:
        info = pltpu.get_tpu_info()
        vmem_cap = int(getattr(info, "vmem_capacity_bytes", vmem_cap))
    except Exception:
        pass
    # Bigger x blocks amortize the ~0.35us/step pipeline overhead; 16 MiB double-buffered
    # is fine on 128 MiB parts (v5e/v6e), 8 MiB on 64 MiB parts (v7x).
    target = (16 << 20) if vmem_cap >= (96 << 20) else (8 << 20)
    return vmem_cap, target


def _choose_tiling(B, C, hw, itemsize, target):
    """Pick (batch_tile, hw_tile).  hw_tile is either the full hw (single spatial tile)
    or a multiple of 128; no wrapper padding is ever required."""
    hw128 = _round_up(hw, 128)

    # Batch tile: keep at least two batch blocks when B >= 2 (feeds both v7x cores),
    # cap at 8 sublanes.
    tb = 8 if B > 8 else max(1, B // 2)

    def blk_bytes(tb_, hwt):
        return tb_ * C * hwt * itemsize

    # Under VMEM pressure shrink tb first (preserves long contiguous lane runs).
    while tb > 1 and blk_bytes(tb, hw128) > target:
        tb = max(1, tb // 2)

    if blk_bytes(tb, hw128) <= target:
        hw_tile = hw                                       # single full-width spatial tile
    else:
        hw_tile = (target // (tb * C * itemsize)) // 128 * 128
        hw_tile = max(128, min(hw_tile, hw128))
        if hw_tile >= hw:
            hw_tile = hw
    return tb, hw_tile


def channel_attention_kernel(x_ref, w1t_ref, w2t_ref, o_ref, sum_acc, max_acc,
                             *, hw_true, hw_tile, n_hw):
    # x_ref:   (TB, C, HW_TILE)  current batch-tile / spatial-tile of the feature map
    # w1t_ref: (C, MID)          fc1 weight, pre-transposed (W1.T), resident in VMEM
    # w2t_ref: (MID, C)          fc2 weight, pre-transposed (W2.T), resident in VMEM
    # o_ref:   (TB, 1, C)        sigmoid(channel attention), written on the last HW tile
    # sum_acc/max_acc: (TB, C)   f32 running-sum / running-max scratch
    h_idx = pl.program_id(1)
    rem = hw_true - (n_hw - 1) * hw_tile          # valid lanes in the last tile (static)

    @pl.when(h_idx == 0)
    def _init():
        sum_acc[...] = jnp.zeros_like(sum_acc)
        max_acc[...] = jnp.full_like(max_acc, -jnp.inf)

    x = x_ref[...]                                # (TB, C, HW_TILE), native dtype

    def accumulate(valid):
        if valid == x.shape[-1]:
            xs, xm = x, x                         # fast path: no mask work
        else:
            lane = jax.lax.broadcasted_iota(jnp.int32, (1, 1, x.shape[-1]), 2)
            m = lane < valid
            xs = jnp.where(m, x, jnp.zeros_like(x))
            xm = jnp.where(m, x, jnp.full_like(x, -jnp.inf))
        sum_acc[...] += jnp.sum(xs, axis=-1, dtype=jnp.float32)          # (TB, C)
        max_acc[...] = jnp.maximum(max_acc[...],
                                   jnp.max(xm, axis=-1).astype(jnp.float32))

    if rem == hw_tile:
        # hw divides evenly (or single full-width tile): never any mask work.
        accumulate(hw_tile)
    else:
        # Pay the iota/compare/select VPU cost only on the (partial) last tile.
        @pl.when(h_idx < n_hw - 1)
        def _acc_full():
            accumulate(hw_tile)

        @pl.when(h_idx == n_hw - 1)
        def _acc_last():
            accumulate(rem)

    @pl.when(h_idx == n_hw - 1)
    def _finalize():
        avg = sum_acc[...] * (1.0 / hw_true)      # (TB, C) f32, true-HW mean
        mx = max_acc[...]                         # (TB, C) f32
        tb = avg.shape[0]

        # Fuse the avg / max branches into one stacked MXU pass per matmul.
        stacked = jnp.concatenate([avg, mx], axis=0)                     # (2*TB, C)
        h1 = jnp.dot(stacked, w1t_ref[...],
                     preferred_element_type=jnp.float32)                 # fc1 -> (2*TB, MID)
        h1 = jnp.where(h1 > 0, h1, 0.01 * h1)                            # leaky_relu (0.01)
        h2 = jnp.dot(h1, w2t_ref[...],
                     preferred_element_type=jnp.float32)                 # fc2 -> (2*TB, C)

        out = h2[:tb] + h2[tb:]                                          # avg + max branch
        o_ref[...] = jax.nn.sigmoid(out).astype(o_ref.dtype)[:, None, :]


def channel_attention(x, w1, w2, *, block_target_bytes=None):
    """x: (B, C, H, W) NCHW; w1: (MID, C); w2: (C, MID). Returns (B, C, 1, 1)."""
    B, C, H, W = x.shape
    MID = w1.shape[0]
    hw = H * W
    if not jnp.issubdtype(x.dtype, jnp.floating):
        raise ValueError("channel_attention expects a floating-point feature map")
    itemsize = jnp.dtype(x.dtype).itemsize
    w_itemsize = jnp.dtype(w1.dtype).itemsize

    vmem_cap, auto_target = _device_budgets()
    target = block_target_bytes if block_target_bytes is not None else auto_target

    tb, hw_tile = _choose_tiling(B, C, hw, itemsize, target)
    nb = pl.cdiv(B, tb)
    nhw = pl.cdiv(hw, hw_tile)

    # Free contiguous collapse; no HBM padding copy anywhere.
    x_flat = x.reshape(B, C, hw)
    # Keep weights in their native dtype (bf16 feeds the MXU natively); tiny transposes.
    w1t = w1.T  # (C, MID)
    w2t = w2.T  # (MID, C)

    kernel = functools.partial(channel_attention_kernel,
                               hw_true=hw, hw_tile=hw_tile, n_hw=nhw)

    cost = pl.CostEstimate(
        flops=2 * B * C * hw + 8 * B * C * MID,
        transcendentals=B * C,
        bytes_accessed=B * C * hw * itemsize + 2 * C * MID * w_itemsize + B * C * itemsize,
    )

    # VMEM budget: double-buffered x block + weights + output block + scratch + slack,
    # clamped to this generation's physical VMEM minus headroom (64 MiB on v7x).
    blk_x = tb * C * _round_up(hw_tile, 128) * itemsize
    w_bytes = 2 * C * MID * w_itemsize
    out_blk = tb * C * itemsize
    scratch_bytes = 2 * tb * C * 4
    vmem_need = 2 * blk_x + 2 * w_bytes + 2 * out_blk + scratch_bytes + (2 << 20)
    vmem_limit = int(min(max(vmem_need, 32 << 20), vmem_cap - (4 << 20)))

    out = pl.pallas_call(
        kernel,
        out_shape=jax.ShapeDtypeStruct((B, 1, C), x.dtype),
        grid_spec=pltpu.PrefetchScalarGridSpec(
            num_scalar_prefetch=0,
            grid=(nb, nhw),                                    # batch tiles, HW reduction last
            in_specs=[
                pl.BlockSpec((tb, C, hw_tile), lambda b, h: (b, 0, h)),
                pl.BlockSpec((C, MID), lambda b, h: (0, 0)),   # resident weights
                pl.BlockSpec((MID, C), lambda b, h: (0, 0)),
            ],
            out_specs=pl.BlockSpec((tb, 1, C), lambda b, h: (b, 0, 0)),
            scratch_shapes=[
                pltpu.VMEM((tb, C), jnp.float32),              # running sum
                pltpu.VMEM((tb, C), jnp.float32),              # running max
            ],
        ),
        compiler_params=pltpu.CompilerParams(
            dimension_semantics=("parallel", "arbitrary"),
            vmem_limit_bytes=vmem_limit,
        ),
        cost_estimate=cost,
    )(x_flat, w1t, w2t)

    return out.reshape(B, C, 1, 1)


def channel_attention_ref(x, w1, w2):
    """Pure-JAX reference mirroring the PyTorch forward."""
    avg = jnp.mean(x, axis=(2, 3))                        # (B, C)
    mx = jnp.max(x, axis=(2, 3))                          # (B, C)

    def branch(v):
        h = v @ w1.T                                      # (B, MID)
        h = jnp.where(h > 0, h, 0.01 * h)
        return h @ w2.T                                   # (B, C)

    out = jax.nn.sigmoid(branch(avg) + branch(mx))
    return out[:, :, None, None]


if __name__ == "__main__":
    key = jax.random.PRNGKey(0)

    # (shape, forced x-block budget). The forced-budget cases exercise the multi-tile
    # spatial reduction and the masked partial last tile with small inputs.
    cases = [
        ((2, 4, 16, 16), None),        # canonical small shape, single spatial tile
        ((3, 8, 7, 7), None),          # HW=49 < 128: full-width last dim, no mask
        ((2, 8, 48, 48), None),        # HW=2304, single tile at the default budget
        ((2, 8, 48, 48), 64 * 1024),   # multi-tile + masked partial last tile (rem=256)
        ((3, 8, 32, 32), 16 * 1024),   # multi-tile, evenly dividing (no mask), nb=3
    ]

    for (B, C, H, W), budget in cases:
        MID = max(64, C // 2)
        kx, k1, k2, key = jax.random.split(key, 4)
        x = jax.random.normal(kx, (B, C, H, W), dtype=jnp.float32)
        w1 = jax.random.normal(k1, (MID, C), dtype=jnp.float32) * 0.1
        w2 = jax.random.normal(k2, (C, MID), dtype=jnp.float32) * 0.1

        out = jax.block_until_ready(channel_attention(x, w1, w2, block_target_bytes=budget))
        ref = channel_attention_ref(x, w1, w2)

        assert out.shape == (B, C, 1, 1), out.shape
        assert jnp.allclose(out, ref, atol=1e-5, rtol=1e-5), (
            f"shape {(B, C, H, W)} budget {budget}: max err {jnp.max(jnp.abs(out - ref))}")

    print("KERNEL_OK")
</pallas_src>

<mosaic_0001>
module attributes {stable_mosaic.version = 11 : i64} {
  func.func @channel_attention_kernel(%arg0: i32, %arg1: i32, %arg2: memref<1x4x256xf32, #tpu.memory_space<vmem>>, %arg3: memref<4x64xf32, #tpu.memory_space<vmem>>, %arg4: memref<64x4xf32, #tpu.memory_space<vmem>>, %arg5: memref<1x1x4xf32, #tpu.memory_space<vmem>>, %arg6: memref<1x4xf32, #tpu.memory_space<vmem>>, %arg7: memref<1x4xf32, #tpu.memory_space<vmem>>) attributes {dimension_semantics = [#tpu.dimension_semantics<parallel>, #tpu.dimension_semantics<arbitrary>], iteration_bounds = array<i64: 2, 1>, scalar_prefetch = 0 : i64, scratch_operands = 2 : i64, tpu.core_type = #tpu.core_type<tc>, window_params = [{transform_indices = @transform_0, window_bounds = array<i64: 1, 4, 256>}, {pipeline_mode = #tpu.pipeline_mode<synchronous>, transform_indices = @transform_1, window_bounds = array<i64: 4, 64>}, {pipeline_mode = #tpu.pipeline_mode<synchronous>, transform_indices = @transform_2, window_bounds = array<i64: 64, 4>}, {transform_indices = @transform_3, window_bounds = array<i64: 1, 1, 4>}]} {
    %c0_i32 = arith.constant 0 : i32
    %0 = arith.cmpi eq, %arg1, %c0_i32 : i32
    %1 = arith.extui %0 : i1 to i32
    %c0_i32_0 = arith.constant 0 : i32
    %2 = arith.cmpi ne, %1, %c0_i32_0 : i32
    scf.if %2 {
      %cst_14 = arith.constant 0.000000e+00 : f32
      %15 = vector.broadcast %cst_14 : f32 to vector<1x4xf32>
      %c0_15 = arith.constant 0 : index
      %c0_16 = arith.constant 0 : index
      %16 = vector.load %arg6[%c0_15, %c0_16] : memref<1x4xf32, #tpu.memory_space<vmem>>, vector<1x4xf32>
      tpu.vector_store %arg6[%c0_15, %c0_16], %15 {strides = array<i32>} : memref<1x4xf32, #tpu.memory_space<vmem>>, vector<1x4xf32>,
      %cst_17 = arith.constant 0xFF800000 : f32
      %17 = vector.broadcast %cst_17 : f32 to vector<1x4xf32>
      %c0_18 = arith.constant 0 : index
      %c0_19 = arith.constant 0 : index
      %18 = vector.load %arg7[%c0_18, %c0_19] : memref<1x4xf32, #tpu.memory_space<vmem>>, vector<1x4xf32>
      tpu.vector_store %arg7[%c0_18, %c0_19], %17 {strides = array<i32>} : memref<1x4xf32, #tpu.memory_space<vmem>>, vector<1x4xf32>,
    } else {
    }
    %c0 = arith.constant 0 : index
    %c0_1 = arith.constant 0 : index
    %c0_2 = arith.constant 0 : index
    %3 = vector.load %arg2[%c0, %c0_1, %c0_2] : memref<1x4x256xf32, #tpu.memory_space<vmem>>, vector<1x4x256xf32>
    %c0_3 = arith.constant 0 : index
    %c0_4 = arith.constant 0 : index
    %4 = vector.load %arg6[%c0_3, %c0_4] : memref<1x4xf32, #tpu.memory_space<vmem>>, vector<1x4xf32>
    %cst = arith.constant dense<0.000000e+00> : vector<1x4xf32>
    %5 = vector.multi_reduction <add>, %3, %cst [2] : vector<1x4x256xf32> to vector<1x4xf32>
    %6 = arith.addf %4, %5 : vector<1x4xf32>
    %c0_5 = arith.constant 0 : index
    %c0_6 = arith.constant 0 : index
    %7 = vector.load %arg6[%c0_5, %c0_6] : memref<1x4xf32, #tpu.memory_space<vmem>>, vector<1x4xf32>
    tpu.vector_store %arg6[%c0_5, %c0_6], %6 {strides = array<i32>} : memref<1x4xf32, #tpu.memory_space<vmem>>, vector<1x4xf32>,
    %c0_7 = arith.constant 0 : index
    %c0_8 = arith.constant 0 : index
    %8 = vector.load %arg7[%c0_7, %c0_8] : memref<1x4xf32, #tpu.memory_space<vmem>>, vector<1x4xf32>
    %cst_9 = arith.constant dense<0xFF800000> : vector<1x4xf32>
    %9 = vector.multi_reduction <maximumf>, %3, %cst_9 [2] : vector<1x4x256xf32> to vector<1x4xf32>
    %10 = arith.maximumf %8, %9 : vector<1x4xf32>
    %c0_10 = arith.constant 0 : index
    %c0_11 = arith.constant 0 : index
    %11 = vector.load %arg7[%c0_10, %c0_11] : memref<1x4xf32, #tpu.memory_space<vmem>>, vector<1x4xf32>
    tpu.vector_store %arg7[%c0_10, %c0_11], %10 {strides = array<i32>} : memref<1x4xf32, #tpu.memory_space<vmem>>, vector<1x4xf32>,
    %c0_i32_12 = arith.constant 0 : i32
    %12 = arith.cmpi eq, %arg1, %c0_i32_12 : i32
    %13 = arith.extui %12 : i1 to i32
    %c0_i32_13 = arith.constant 0 : i32
    %14 = arith.cmpi ne, %13, %c0_i32_13 : i32
    scf.if %14 {
      %c0_14 = arith.constant 0 : index
      %c0_15 = arith.constant 0 : index
      %15 = vector.load %arg6[%c0_14, %c0_15] : memref<1x4xf32, #tpu.memory_space<vmem>>, vector<1x4xf32>
      %cst_16 = arith.constant 3.906250e-03 : f32
      %16 = vector.broadcast %cst_16 : f32 to vector<1x4xf32>
      %17 = arith.mulf %15, %16 : vector<1x4xf32>
      %c0_17 = arith.constant 0 : index
      %c0_18 = arith.constant 0 : index
      %18 = vector.load %arg7[%c0_17, %c0_18] : memref<1x4xf32, #tpu.memory_space<vmem>>, vector<1x4xf32>
      %19 = tpu.concatenate %17, %18 in 0 : vector<1x4xf32>, vector<1x4xf32> -> vector<2x4xf32>
      %c0_19 = arith.constant 0 : index
      %c0_20 = arith.constant 0 : index
      %20 = vector.load %arg3[%c0_19, %c0_20] : memref<4x64xf32, #tpu.memory_space<vmem>>, vector<4x64xf32>
      %cst_21 = arith.constant dense<0.000000e+00> : vector<2x64xf32>
      %21 = tpu.matmul %19, %20, %cst_21 {dimension_numbers = #tpu.dot_dimension_numbers<[1], [0], [0], [1], [0, 0, 1, 1], [], []>} : vector<2x4xf32>, vector<4x64xf32>, vector<2x64xf32> -> vector<2x64xf32>
      %cst_22 = arith.constant 0.000000e+00 : f32
      %22 = vector.broadcast %cst_22 : f32 to vector<2x64xf32>
      %23 = arith.cmpf ogt, %21, %22 : vector<2x64xf32>
      %cst_23 = arith.constant 0.00999999977 : f32
      %24 = vector.broadcast %cst_23 : f32 to vector<2x64xf32>
      %25 = arith.mulf %24, %21 : vector<2x64xf32>
      %26 = arith.select %23, %21, %25 : vector<2x64xi1>, vector<2x64xf32>
      %c0_24 = arith.constant 0 : index
      %c0_25 = arith.constant 0 : index
      %27 = vector.load %arg4[%c0_24, %c0_25] : memref<64x4xf32, #tpu.memory_space<vmem>>, vector<64x4xf32>
      %cst_26 = arith.constant dense<0.000000e+00> : vector<2x4xf32>
      %28 = tpu.matmul %26, %27, %cst_26 {dimension_numbers = #tpu.dot_dimension_numbers<[1], [0], [0], [1], [0, 0, 1, 1], [], []>} : vector<2x64xf32>, vector<64x4xf32>, vector<2x4xf32> -> vector<2x4xf32>
      %29 = vector.extract_strided_slice %28 {offsets = [0, 0], sizes = [1, 4], strides = [1, 1]} : vector<2x4xf32> to vector<1x4xf32>
      %30 = vector.extract_strided_slice %28 {offsets = [1, 0], sizes = [1, 4], strides = [1, 1]} : vector<2x4xf32> to vector<1x4xf32>
      %31 = arith.addf %29, %30 : vector<1x4xf32>
      %32 = arith.negf %31 : vector<1x4xf32>
      %33 = math.exp %32 : vector<1x4xf32>
      %cst_27 = arith.constant 1.000000e+00 : f32
      %34 = vector.broadcast %cst_27 : f32 to vector<1x4xf32>
      %35 = arith.addf %34, %33 : vector<1x4xf32>
      %36 = arith.divf %34, %35 : vector<1x4xf32>
      %37 = vector.shape_cast %36 : vector<1x4xf32> to vector<1x1x4xf32>
      %c0_28 = arith.constant 0 : index
      %c0_29 = arith.constant 0 : index
      %c0_30 = arith.constant 0 : index
      %38 = vector.load %arg5[%c0_28, %c0_29, %c0_30] : memref<1x1x4xf32, #tpu.memory_space<vmem>>, vector<1x1x4xf32>
      tpu.vector_store %arg5[%c0_28, %c0_29, %c0_30], %37 {strides = array<i32>} : memref<1x1x4xf32, #tpu.memory_space<vmem>>, vector<1x1x4xf32>,
    } else {
    }
    return
  }
  func.func @transform_0(%arg0: i32, %arg1: i32) -> (i32, i32, i32) {
    %c0_i32 = arith.constant 0 : i32
    %c0_i32_0 = arith.constant 0 : i32
    return %arg0, %c0_i32, %arg1 : i32, i32, i32
  }
  func.func @transform_1(%arg0: i32, %arg1: i32) -> (i32, i32) {
    %c0_i32 = arith.constant 0 : i32
    %c0_i32_0 = arith.constant 0 : i32
    %c0_i32_1 = arith.constant 0 : i32
    return %c0_i32, %c0_i32_0 : i32, i32
  }
  func.func @transform_2(%arg0: i32, %arg1: i32) -> (i32, i32) {
    %c0_i32 = arith.constant 0 : i32
    %c0_i32_0 = arith.constant 0 : i32
    %c0_i32_1 = arith.constant 0 : i32
    return %c0_i32, %c0_i32_0 : i32, i32
  }
  func.func @transform_3(%arg0: i32, %arg1: i32) -> (i32, i32, i32) {
    %c0_i32 = arith.constant 0 : i32
    %c0_i32_0 = arith.constant 0 : i32
    %c0_i32_1 = arith.constant 0 : i32
    return %arg0, %c0_i32, %c0_i32_0 : i32, i32, i32
  }
}

</mosaic_0001>

<bundles_post_ra>
// kernel: tpu_custom_call.1
= control target key start
LH: loop header
LB: loop body
LE: loop exit
PB: predicated region body
PF: predicated region fallthrough
CT: control target
= control target key end

     0   :  { %8 = vsyncpa [#allocation5], 0  ;;  %s1003_s0 = inlined_call_operand.vmem [shape: f32[2,4,256], index: 0, kind: input, shape index: {}]   ;;  %s1004_s1 = inlined_call_operand.vmem [shape: f32[4,64], index: 1, kind: input, shape index: {}]   ;;  %s1005_s2 = inlined_call_operand.vmem [shape: f32[64,4], index: 2, kind: input, shape index: {}]   ;;  %s1006_s3 = inlined_call_operand.hbm [shape: f32[2,1,4], index: 3, kind: output, shape index: {}]  }
   0x1   :  { %10 = vsyncpa [#allocation5 + $0x1], 0  ;;  %s845_s12 = smov 0   ;;  %s847_s13 = smov 0  }
   0x2   :  { %s849_s14 = smov 0   ;;  %s851_s15 = smov 0  }
   0x3   :  { %s853_s16 = smov 0   ;;  %s855_s17 = smov 0  }
   0x4 LB: > { %s623_s18 = sadd.s32 4294967295, %s817_s17   ;;  %s624_s19 = sadd.s32 4294967294, %s817_s17   ;;  %s817_s17 = sphi %s855_s17, %s16_s17   ;;  %s813_s16 = sphi %s853_s16, %s1013_s16   ;;  %s809_s15 = sphi %s851_s15, %s1012_s15   ;;  %s805_s14 = sphi %s849_s14, %s1011_s14   ;;  %s801_s13 = sphi %s847_s13, %s1010_s13   ;;  %s797_s12 = sphi %s845_s12, %s1009_s12  }
   0x5   : > { %s28_s20 = sadd.s32 1, %s813_s16  ;;  %s105_s21 = sadd.s32 1, %s805_s14 }
   0x6   : > { %p30_p0 = scmp.ge.s32.totalorder %s28_s20, 2  ;;  %p115_p1 = scmp.ne.s32.totalorder %s805_s14, %s801_s13 }
   0x7   : > { %p116_p2 = scmp.eq.s32.totalorder %s623_s18, 1  ;;  %p121_p3 = scmp.ne.s32.totalorder %s801_s13, %s797_s12 }
   0x8   : > { %s1015_s20 = smov (%p30_p0, %s28_s20), 0  ;;  %p122_p5 = scmp.eq.s32.totalorder %s624_s19, 1 }
   0x9   : > { %p885_p4 = por %p116_p2, %p115_p1  ;;  %s102_s23 = ssub.s32 %s813_s16, %s1015_s20 }
   0xa   : > { %p627_p6 = scmp.ge.s32.totalorder %s817_s17, 1  ;;  %p103_p7 = scmp.eq.s32.totalorder %s102_s23, 0 }
   0xb   : > { %p892_p8 = por %p122_p5, %p121_p3  ;;  %p159_p9 = scmp.lt.s32.totalorder %s817_s17, 3 }
   0xc   : > { %s898_s25 = scalar_select %p103_p7, %s805_s14, %s105_s21  }
   0xd   : > { %p160_p10 = pnand %p627_p6, %p159_p9 }
   0xe   : > { %p187_p11 = scmp.lt.s32.totalorder (!%p160_p10), %s809_s15, 1  ;;  %s184_s5 = sand.u32 (!%p160_p10), 1, %s801_s13  }
   0xf   : > { %163 = sbr.rel (%p160_p10) target bundleno = 762 (0x2fa), region = 32  ;;  %s635_s6 = sshll.u32 (!%p160_p10), %s809_s15, 4 }
  0x10   : > { %s185_s7 = scalar_lea.vmem (!%p160_p10), [#allocation4], %s184_s5  ;;  %s962_s11 = scalar_lea.hbm (!%p160_p10), %s1006_s3, %s635_s6 }
  0x11   : > { %s554_s8 = sshll.u32 (!%p160_p10), %s185_s7, 4  ;;  %s542_s18 = scalar_lea.sflag (!%p160_p10), [#allocation5], %s184_s5  ;;  %s555_s8 = int_to_ptr.vmem [resolvable:$true] %s554_s8 }
  0x12   : > { %s741_s19 = scalar_lea.vmem (!%p160_p10), %s555_s8, 16  ;;  %s824_s21 = smov (!%p160_p10), [#allocation4]  }
  0x13   : > { %p742_p12 = scmp.ne.s32.totalorder (!%p160_p10), %s555_s8, %s741_s19  ;;  %s745_s23 = sshll.u32 (!%p160_p10), %s824_s21, 4  ;;  %s746_s23 = int_to_ptr.vmem [resolvable:$false] %s745_s23 }
  0x14   : > { %s188_s26 = scalar_select %p187_p11, %s809_s15, 1  ;;  %vm208_vm0 = vcmask 1043456   ;;  %v819_v8 = vmov 0   ;;  %v215_v9 = vlaneseq  ;;  %vm200_vm1 = vcmask 24576   ;;  %v367_v45 = vld [vmem:[%s1004_s1] sm:$0xf] }
  0x15   : > { %734 = vset.pattern.permute.xlu1 %v819_v8  ;;  %735 = vset.pattern.permute.xlu0 %v819_v8  ;;  %v820_v12 = vmov 0.0   ;;  %v821_v14 = vmov 1966171168   ;;  %v822_v42 = vmov -inf   ;;  %vm823_vm2 = vmmov 0   ;;  %v455_v46 = vld [vmem:[%s1005_s2 + $0x38] sm:$0xff]  ;;  %p743_p13 = pnand %p742_p12, %p885_p4  ;;  %p748_p1 = scmp.lt.s32.totalorder %s555_s8, %s746_s23 }
  0x16   : > { %s638_s27 = sshll.u32 %s188_s26, 3  ;;  %v216_v10 = vshrl.u32 %v215_v9, 7  ;;  %v259_v11 = vand.u32 127, %v215_v9  ;;  %201 = vst.msk [vmem:[#allocation2] sm:$0x1] %vm200_vm1, %v820_v12  ;;  %650 = vmatprep.subr.mxu0 %v820_v12  ;;  %655 = vmatprep.subr.mxu1 %v820_v12  ;;  %v234_v15 = vunpack.c.l.s4 %v821_v14  ;;  %v454_v47 = vld [vmem:[%s1005_s2 + $0x30] sm:$0xff] }
  0x17   : > { %s194_s30 = scalar_lea.vmem %s1003_s0, %s638_s27  ;;  %202 = vst.msk [vmem:[#allocation3] sm:$0x1] %vm200_vm1, %v822_v42  ;;  %651 = vmatpush3.msk.msra.mxu0 %vm208_vm0, %v367_v45  ;;  %652 = vmatprep.mubr.msk.f32.mxu0 %vm823_vm2, %v820_v12  ;;  %v453_v48 = vld [vmem:[%s1005_s2 + $0x28] sm:$0xff]  ;;  %v452_v49 = vld [vmem:[%s1005_s2 + $0x20] sm:$0xff]  ;;  %v451_v50 = vld [vmem:[%s1005_s2 + $0x18] sm:$0xff]  ;;  %vm365_vm3 = vcmask 1040384   ;;  %p744_p0 = pneg %p743_p13 }
  0x18   : > { %v203_v0 = vld [vmem:[%s194_s30] sm:$0xff]  ;;  %v913_v13 = vsub.s32 %v259_v11, %v216_v10  ;;  %v217_v16 = vsub.s32 0, %v216_v10  ;;  %v221_v17 = vsub.s32 1, %v216_v10  ;;  %v225_v18 = vsub.s32 2, %v216_v10  ;;  %671 = vmatprep.mubr.msk.f32.mxu1 %vm823_vm2, %v820_v12  ;;  %656 = vmatpush3.msra.mxu1 %v455_v46  ;;  %v450_v51 = vld [vmem:[%s1005_s2 + $0x10] sm:$0xff]  ;;  %s747_s15 = scalar_lea.vmem %s746_s23, 32 }
  0x19   : > { %v206_v1 = vcombine.high %v203_v0, %v203_v0  ;;  %v209_v2 = vsel %vm208_vm0, %v203_v0, 0.0  ;;  %v283_v4 = vsel %vm208_vm0, %v203_v0, -inf  ;;  %v229_v19 = vsub.s32 3, %v216_v10  ;;  %657 = vmatprep.subr.mxu1 %v820_v12  ;;  %p749_p2 = scmp.lt.s32.totalorder %s747_s15, %s741_s19 }
  0x1a   : > { %v235_v20 = vunpack.c.0.s8 %v234_v15  ;;  %658 = vmatpush3.msra.mxu1 %v454_v47  ;;  %vm368_vm4 = vcmask 31744   ;;  %vm456_vm6 = vcmask 523264  }
  0x1b   : > { %v210_v3 = vsel %vm208_vm0, %v206_v1, 0.0  ;;  %v284_v5 = vsel %vm208_vm0, %v206_v1, -inf  ;;  %659 = vmatprep.subr.mxu1 %v820_v12  ;;  %p750_p3 = por %p749_p2, %p748_p1 }
  0x1c   : > { %v211_v6 = vadd.f32 %v210_v3, %v209_v2  ;;  %v285_v7 = vmax.f32 %v283_v4, %v284_v5  ;;  %v238_v26 = vsub.s32 %v235_v20, %v216_v10  ;;  %660 = vmatpush3.msra.mxu1 %v453_v48  ;;  %v449_v4 = vld [vmem:[%s1005_s2 + $0x8] sm:$0xff]  ;;  %v448_v5 = vld [vmem:[%s1005_s2] sm:$0xff] }
  0x1d   : > { %661 = vmatprep.subr.mxu1 %v820_v12  ;;  %v204_v55 = vld [vmem:[#allocation2] sm:$0x1]  ;;  %p751_p5 = pnand %p750_p3, %p744_p0 }
  0x1e   : > { %212 = vadd.xlane.f32.xlu0 %v211_v6  ;;  %662 = vmatpush3.msra.mxu1 %v452_v49  ;;  %v282_v61 = vld [vmem:[#allocation3] sm:$0x1] }
  0x1f   : > { %663 = vmatprep.subr.mxu1 %v820_v12 }
  0x20   : > { %664 = vmatpush3.msra.mxu1 %v451_v50 }
  0x21   : > { %665 = vmatprep.subr.mxu1 %v820_v12 }
  0x22   : > { %286 = vmax.xlane.f32.xlu0 %v285_v7  ;;  %666 = vmatpush3.msra.mxu1 %v450_v51 }
  0x23   : > { %667 = vmatprep.subr.mxu1 %v820_v12 }
  0x24   : > { %668 = vmatpush3.msra.mxu1 %v449_v4 }
  0x25   : > { %669 = vmatprep.subr.mxu1 %v820_v12 }
  0x26   : > { %670 = vmatpush3.msra.mxu1 %v448_v5 }
  0xa7   : > { %v213_v21 = vpop.xlane.xlu0 %212 }
  0xa8   : > { %v218_v22 = vrot.slane %v213_v21, %v217_v16  ;;  %v222_v23 = vrot.slane %v213_v21, %v221_v17  ;;  %v226_v24 = vrot.slane %v213_v21, %v225_v18  ;;  %v230_v25 = vrot.slane %v213_v21, %v229_v19 }
  0xaa   : > { %v231_v27 = vcombine.low %v218_v22, %v222_v23  ;;  %v232_v28 = vcombine.low %v226_v24, %v230_v25 }
  0xab   : > { %v287_v29 = vpop.xlane.xlu0 %286 }
  0xac   : > { %v292_v30 = vrot.slane %v287_v29, %v217_v16  ;;  %v296_v31 = vrot.slane %v287_v29, %v221_v17  ;;  %v300_v32 = vrot.slane %v287_v29, %v225_v18  ;;  %v304_v33 = vrot.slane %v287_v29, %v229_v19 }
  0xad   : > { %v239_v34 = vrot.slane %v231_v27, %v238_v26  ;;  %v246_v35 = vrot.slane %v232_v28, %v238_v26 }
  0xae   : > { %v305_v36 = vcombine.low %v292_v30, %v296_v31  ;;  %v306_v37 = vcombine.low %v300_v32, %v304_v33 }
  0xaf   : > { %v247_v38 = vcombine.low %v239_v34, %v246_v35 }
  0xb0   : > { %v313_v39 = vrot.slane %v305_v36, %v238_v26  ;;  %v320_v40 = vrot.slane %v306_v37, %v238_v26 }
  0xb1   : > { %v254_v41 = vrot.slane %v247_v38, %v238_v26 }
  0xb2   : > { %v321_v43 = vcombine.low %v313_v39, %v320_v40 }
  0xb3   : > { %256 = vperm.xlu1 %734, %v254_v41  }
  0xb4   : > { %v328_v44 = vrot.slane %v321_v43, %v238_v26 }
  0xb7   : > { %330 = vperm.xlu1 %734, %v328_v44  }
 0x12e   : > { %v257_v52 = vpop.permute.xlu1 %256 }
 0x12f   : > { %v263_v53 = vrot.slane %v257_v52, %v913_v13 }
 0x131   : > { %v270_v54 = vrot.slane %v263_v53, %v238_v26 }
 0x132   : > { %v331_v56 = vpop.permute.xlu1 %330 }
 0x133   : > { %v277_v57 = vrot.slane %v270_v54, %v238_v26  ;;  %v335_v58 = vrot.slane %v331_v56, %v913_v13 }
 0x135   : > { %v279_v59 = vadd.f32 %v277_v57, %v204_v55  ;;  %v342_v60 = vrot.slane %v335_v58, %v238_v26 }
 0x137   : > { %281 = vst.msk [vmem:[#allocation2] sm:$0x1] %vm200_vm1, %v279_v59  ;;  %v349_v62 = vrot.slane %v342_v60, %v238_v26 }
 0x139   : > { %v351_v63 = vmax.f32 %v282_v61, %v349_v62 }
 0x13b   : > { %352 = vst.msk [vmem:[#allocation3] sm:$0x1] %vm200_vm1, %v351_v63 }
 0x13e   : > { %v356_v0 = vld [vmem:[#allocation2] sm:$0x1] }
 0x13f   : > { %v357_v1 = vmul.f32 0.00390625, %v356_v0 }
 0x142   : > { %v630_v2 = vld [vmem:[#allocation3] ss:$0 sm:$0xff] }
 0x143   : > { %v366_v3 = vsel %vm365_vm3, %v357_v1, %v630_v2 }
 0x144   : > { %653 = vmatmul.mubr.msk.f32.vlgmr.msra.gmra.mxu0 %vm368_vm4, %v366_v3 }
 0x204   : > { %v441_v6 = vpop.f32.mrf.mxu0 }
 0x205   : > { %vm445_vm5 = vcmp.gt.f32.partialorder %v441_v6, 0.0  ;;  %v446_v7 = vmul.f32 0.01, %v441_v6 }
 0x206   : > { %v654_v8 = vpop.f32.mrf.mxu0 }
 0x207   : > { %v447_v9 = vsel %vm445_vm5, %v441_v6, %v446_v7 }
 0x208   : > { %672 = vmatmul.mubr.msk.f32.vlgmr.msra.gmra.mxu1 %vm456_vm6, %v447_v9 }
 0x2c8   : > { %v526_v10 = vpop.f32.mrf.mxu1 }
 0x2c9   : > { %v531_v11 = vrot.slane %v526_v10, 1 }
 0x2ca   : > { %v673_v13 = vpop.f32.mrf.mxu1 }
 0x2cb   : > { %v533_v14 = vadd.f32 %v531_v11, %v526_v10 }
 0x2cd   : > { %v634_v15 = vmul.f32 -1.442695, %v533_v14 }
 0x2cf   : > { %737 = vpow2.f32 %v634_v15 }
 0x2dc   : > { %v738_v12 = vpop.eup %737 }
 0x2dd   : > { %v537_v16 = vadd.f32 1.0, %v738_v12 }
 0x2df   : > { %739 = vrcp.f32 %v537_v16 }
 0x2ec   : > { %v740_v17 = vpop.eup %739 }
 0x2ed   : > { %540 = vst.msk [vmem:[%s185_s7] sm:$0x1] %vm200_vm1, %v740_v17 }
 0x2ee   : > { %754 = shalt.err (!%p751_p5)
}
 0x2ef   : > { %s755_s26 = scalar_lea.hbm %s962_s11, 16  ;;  %s759_s29 = scalar_lea.hbm %s1006_s3, 32 }
 0x2f0   : > { %p756_p6 = scmp.ne.s32.totalorder %s962_s11, %s755_s26  ;;  %p760_p10 = scmp.lt.s32.totalorder %s962_s11, %s1006_s3 }
 0x2f1   : > { %p761_p11 = scmp.lt.s32.totalorder %s759_s29, %s755_s26 }
 0x2f2   : > { %p757_p7 = pnand %p756_p6, %p885_p4 }
 0x2f3   : > { %p762_p12 = por %p761_p11, %p760_p10 }
 0x2f4   : > { %p758_p9 = pneg %p757_p7 }
 0x2f6   : > { %p763_p13 = pnand %p762_p12, %p758_p9 }
 0x2f8   : > { %766 = shalt.err (!%p763_p13)
}
 0x2f9   : > { %674 = dma.vmem_to_hbm [thread:$0]  (%p885_p4), %s555_s8, 16, %s962_s11, %s542_s18  }
 0x2fa PF: > { %p680_p0 = scmp.ge.s32.totalorder %s817_s17, 2  ;;  %s566_s5 = sand.u32 1, %s797_s12  }
 0x2fb   : > { %s567_s6 = scalar_lea.sflag [#allocation5], %s566_s5 }
 0x2fc   : > { %p677_p1 = pnand %p680_p0, %p892_p8 }
 0x2fe   : > { %p678_p2 = pneg %p677_p1 }
 0x300   : > { %792 = dma.done.wait (%p678_p2), %s567_s6, 16  }
 0x301   : > { %794 = vsyncadd (%p678_p2), %s567_s6, 4294967280  ;;  %s16_s17 = sadd.s32 1, %s817_s17   ;;  %s1009_s12 = smov %s801_s13 }
 0x302   : > { %p13_p3 = scmp.ge.s32.totalorder %s16_s17, 4   ;;  %s1010_s13 = smov %s805_s14 }
 0x303   : > { %s1011_s14 = smov %s898_s25  ;;  %s1012_s15 = smov %s813_s16 }
 0x304   : > { %s1013_s16 = smov %s1015_s20  ;;  %15 = sbr.rel (!%p13_p3) target bundleno = 4 (0x4), region = 75 }
 0x309   :  { %571 = vsyncpa [#allocation5], 1 }
 0x30a   :  { %573 = vsyncpa [#allocation5 + $0x1], 1 }

</bundles_post_ra>
